<compile_context>
chip_gen: v7x
topology: tpu7x:2x2x1
jax: 0.10.0
libtpu: 0.0.40
codegen_flags: <defaults>
</compile_context>

<pallas_src>
import functools
import math

import jax
import jax.numpy as jnp
from jax import lax
from jax.experimental import pallas as pl
from jax.experimental.pallas import tpu as pltpu


def _flash_attention_kernel(q_ref, k_ref, v_ref, o_ref,
                            m_ref, l_ref, acc_ref,
                            *, seq_len, block_q, block_k, causal, mask_kv_edge):
    """One (batch, head, q-tile, kv-tile) grid step.

    q_ref: (1, 1, bq, dh)   k_ref/v_ref: (1, 1, bk, dh)   o_ref: (1, 1, bq, dh)
    m_ref/l_ref: (bq, 128) f32 scratch (per-row value replicated across lanes
    so scratch stores are lane-dense), acc_ref: (bq, dh) f32 output accumulator.
    """
    qi = pl.program_id(2)
    ki = pl.program_id(3)
    n_kv = pl.num_programs(3)

    @pl.when(ki == 0)
    def _init():
        m_ref[...] = jnp.full_like(m_ref, -jnp.inf)
        l_ref[...] = jnp.zeros_like(l_ref)
        acc_ref[...] = jnp.zeros_like(acc_ref)

    def _compute(masked):
        q = q_ref[0, 0]                       # (bq, dh); 1/sqrt(dh) folded into Wq
        k = k_ref[0, 0]                       # (bk, dh)
        v = v_ref[0, 0]                       # (bk, dh)

        if masked and mask_kv_edge:
            # Zero out-of-range V rows on the edge tile so padding garbage
            # (possibly NaN/Inf) can never poison p @ v via 0 * NaN.
            kv_idx = ki * block_k + lax.broadcasted_iota(jnp.int32, (block_k, 1), 0)
            v = jnp.where(kv_idx < seq_len, v, jnp.zeros_like(v))

        # QK^T in the input dtype (bf16 fast MXU path) with f32 accumulation.
        # Contract K on its last dim directly (no explicit transpose).
        s = lax.dot_general(q, k, dimension_numbers=(((1,), (1,)), ((), ())),
                            preferred_element_type=jnp.float32)      # (bq, bk) f32

        if masked:
            col = ki * block_k + lax.broadcasted_iota(jnp.int32, (block_q, block_k), 1)
            mask = None
            if causal:
                row = qi * block_q + lax.broadcasted_iota(jnp.int32, (block_q, block_k), 0)
                mask = col <= row
            if mask_kv_edge:
                edge = col < seq_len
                mask = edge if mask is None else jnp.logical_and(mask, edge)
            # s is always f32 here, so the large negative fill cannot overflow.
            s = jnp.where(mask, s, jnp.float32(-1e30))

        m_prev = m_ref[:, :1]                                 # (bq, 1)
        l_prev = l_ref[:, :1]
        m_cur = jnp.max(s, axis=-1, keepdims=True)
        m_new = jnp.maximum(m_prev, m_cur)
        alpha = jnp.exp(m_prev - m_new)                       # rescale factor
        p = jnp.exp(s - m_new)                                # un-normalized probs (f32)
        l_new = alpha * l_prev + jnp.sum(p, axis=-1, keepdims=True)

        acc_ref[...] = alpha * acc_ref[...] + jnp.dot(
            p.astype(v.dtype), v, preferred_element_type=jnp.float32)
        # Lane-dense scratch stores (value replicated across all 128 lanes).
        m_ref[...] = jnp.broadcast_to(m_new, m_ref.shape)
        l_ref[...] = jnp.broadcast_to(l_new, l_ref.shape)

    if causal or mask_kv_edge:
        first_row = qi * block_q
        last_row = first_row + (block_q - 1)
        first_col = ki * block_k
        last_col = first_col + (block_k - 1)

        mask_conds = []
        if causal:
            mask_conds.append(last_col > first_row)           # tile crosses diagonal
        if mask_kv_edge:
            mask_conds.append(ki == n_kv - 1)                 # KV edge tile
        needs_mask = functools.reduce(jnp.logical_or, mask_conds)

        if causal:
            runs = first_col <= last_row                      # not fully masked
            run_masked = jnp.logical_and(runs, needs_mask)
            run_unmasked = jnp.logical_and(runs, jnp.logical_not(needs_mask))
        else:
            run_masked = needs_mask
            run_unmasked = jnp.logical_not(needs_mask)

        @pl.when(run_masked)
        def _():
            _compute(masked=True)

        @pl.when(run_unmasked)
        def _():
            _compute(masked=False)
        # Fully-masked causal tiles are skipped entirely; their K/V DMA is also
        # elided because the clamped index_map re-targets the resident block.
    else:
        _compute(masked=False)

    @pl.when(ki == n_kv - 1)
    def _finalize():
        l = l_ref[:, :1]
        inv_l = pl.reciprocal(l, approx=True)      # EUP vrcp (free slot)
        inv_l = inv_l * (2.0 - l * inv_l)          # one Newton step -> f32 accuracy
        o_ref[0, 0] = (acc_ref[...] * inv_l).astype(o_ref.dtype)


def _pick_block(seq_len, target):
    """Tile size <= target that is a multiple of 8 (sublane rule) unless the
    whole sequence fits in one tile.  The grid uses pl.cdiv + in-kernel edge
    masking, so the block does NOT have to divide seq_len (no silent
    whole-sequence-block fallback / VMEM cliff)."""
    if seq_len <= target:
        return seq_len
    return max(8, (target // 8) * 8)


def _round_up(x, m):
    return (x + m - 1) // m * m


def _tile_vmem_bytes(shape, dtype):
    """Bytes a (..., sublane, lane) tile occupies in VMEM after layout padding."""
    itemsize = jnp.dtype(dtype).itemsize
    dims = list(shape)
    dims[-1] = _round_up(dims[-1], 128)
    if len(dims) >= 2:
        dims[-2] = _round_up(dims[-2], 8 * max(1, 4 // itemsize))
    n = 1
    for d in dims:
        n *= d
    return n * itemsize


def flash_attention(q, k, v, *, causal=False, block_q=512, block_k=512,
                    kv_buffer_count=2):
    """q, k, v: (B, H, S, head_dim) -> (B, H, S, head_dim).

    Note: 1/sqrt(head_dim) is expected to already be folded into q (the module
    folds it into Wq at init, which costs nothing at runtime).
    """
    B, H, S, dh = q.shape
    bq = _pick_block(S, block_q)
    bk = _pick_block(S, block_k)
    n_q = pl.cdiv(S, bq)
    n_kv = pl.cdiv(S, bk)
    mask_kv_edge = (S % bk) != 0

    kernel = functools.partial(
        _flash_attention_kernel,
        seq_len=S, block_q=bq, block_k=bk, causal=causal,
        mask_kv_edge=mask_kv_edge)

    def q_map(b, h, qi, ki):
        return (b, h, qi, 0)

    if causal:
        # Clamp dead (fully-masked) KV steps onto the last block this q-tile
        # needs: the pipeline sees an unchanged block index and elides the DMA,
        # roughly halving causal K/V HBM traffic.
        def kv_map(b, h, qi, ki):
            last_needed = ((qi + 1) * bq - 1) // bk
            return (b, h, jnp.minimum(ki, last_needed), 0)
    else:
        def kv_map(b, h, qi, ki):
            return (b, h, ki, 0)

    kv_kwargs = {}
    if kv_buffer_count != 2:
        # Optional deeper K/V multi-buffering (e.g. 3 on v7x) if DMA is exposed.
        kv_kwargs["pipeline_mode"] = pl.Buffered(kv_buffer_count)
    k_spec = pl.BlockSpec((1, 1, bk, dh), kv_map, **kv_kwargs)
    v_spec = pl.BlockSpec((1, 1, bk, dh), kv_map, **kv_kwargs)

    # VMEM actually required (double-buffered I/O tiles + padded scratch), with
    # 2x headroom; clamp to [32 MiB, 48 MiB] so the limit is always safe on v7x
    # (64 MiB physical per TensorCore) and still generous on v5e/v6e (128 MiB).
    est = (2 * (_tile_vmem_bytes((bq, dh), q.dtype)
                + 2 * _tile_vmem_bytes((bk, dh), q.dtype)
                + _tile_vmem_bytes((bq, dh), q.dtype))
           + 2 * _tile_vmem_bytes((bq, 128), jnp.float32)
           + _tile_vmem_bytes((bq, dh), jnp.float32))
    vmem_limit = int(min(max(2 * est, 32 * 1024 * 1024), 48 * 1024 * 1024))

    itemsize = jnp.dtype(q.dtype).itemsize
    flops = 4 * B * H * S * S * dh                 # QK^T + PV, 2 flops / MAC
    transcendentals = B * H * S * S                # softmax exps
    kv_passes = n_q
    if causal:
        flops //= 2
        transcendentals //= 2
        kv_passes = max(1, (n_q + 1) // 2)
    cost = pl.CostEstimate(
        flops=flops,
        transcendentals=transcendentals,
        bytes_accessed=B * H * S * dh * itemsize * (2 + 2 * kv_passes))

    return pl.pallas_call(
        kernel,
        out_shape=jax.ShapeDtypeStruct((B, H, S, dh), q.dtype),
        grid=(B, H, n_q, n_kv),
        in_specs=[
            pl.BlockSpec((1, 1, bq, dh), q_map),    # Q
            k_spec,                                  # K
            v_spec,                                  # V
        ],
        # Constant across the KV axis -> output block stays resident (accumulator).
        out_specs=pl.BlockSpec((1, 1, bq, dh), q_map),
        scratch_shapes=[
            pltpu.VMEM((bq, 128), jnp.float32),     # running max (lane-broadcast)
            pltpu.VMEM((bq, 128), jnp.float32),     # running sum (lane-broadcast)
            pltpu.VMEM((bq, dh), jnp.float32),      # output accumulator
        ],
        compiler_params=pltpu.CompilerParams(
            dimension_semantics=("parallel", "parallel", "parallel", "arbitrary"),
            vmem_limit_bytes=vmem_limit,
        ),
        cost_estimate=cost,
    )(q, k, v)


class StandardAttentionPallas:
    """Mirrors the PyTorch StandardAttention forward pass.

    Separate q/k/v/out Linear(dim, dim) projections; attention runs in the
    flash Pallas kernel above.  Matmul operands are cast to `compute_dtype`
    (bf16 by default -> fast MXU path on v5e/v6e/v7x) while softmax statistics
    and the output accumulator stay in f32.
    """

    def __init__(self, dim, heads=8, causal=False, key=None,
                 block_q=512, block_k=512, compute_dtype=jnp.bfloat16):
        assert dim % heads == 0, "model dim must be divisible by heads"
        if key is None:
            key = jax.random.PRNGKey(0)
        self.dim = dim
        self.heads = heads
        self.head_dim = dim // heads
        self.causal = causal
        self.scale = 1.0 / math.sqrt(self.head_dim)
        self.block_q = block_q
        self.block_k = block_k
        self.compute_dtype = compute_dtype

        ks = jax.random.split(key, 8)
        init = lambda k, shape: (0.02 * jax.random.normal(k, shape)).astype(jnp.float32)
        self.Wq, self.bq = init(ks[0], (dim, dim)), init(ks[1], (dim,))
        self.Wk, self.bk = init(ks[2], (dim, dim)), init(ks[3], (dim,))
        self.Wv, self.bv = init(ks[4], (dim, dim)), init(ks[5], (dim,))
        self.Wo, self.bo = init(ks[6], (dim, dim)), init(ks[7], (dim,))

        # Fold 1/sqrt(head_dim) into the Q projection once at init (zero runtime
        # cost) instead of rescaling the Q tile on every KV step in the kernel.
        self._Wq_scaled = self.Wq * self.scale
        self._bq_scaled = self.bq * self.scale

    def __call__(self, x, mask=None):
        if mask is not None:
            # TODO(synk): optional additive `mask` argument is not implemented
            # (the PyTorch module's default is mask=None); fail loudly rather
            # than silently returning unmasked attention.
            raise NotImplementedError("additive attention mask is not supported")

        B, S, D = x.shape
        H, dh = self.heads, self.head_dim
        cd = self.compute_dtype

        q = (x @ self._Wq_scaled + self._bq_scaled).astype(cd)
        k = (x @ self.Wk + self.bk).astype(cd)
        v = (x @ self.Wv + self.bv).astype(cd)

        # Heads become a grid axis: (B, S, H*dh) -> (B, H, S, dh).  The kernel
        # then works on contiguous (bq, dh) tiles per head, with no in-kernel
        # head loop or 64-lane slicing of a fused-D tile.
        q = q.reshape(B, S, H, dh).transpose(0, 2, 1, 3)
        k = k.reshape(B, S, H, dh).transpose(0, 2, 1, 3)
        v = v.reshape(B, S, H, dh).transpose(0, 2, 1, 3)

        o = flash_attention(q, k, v, causal=self.causal,
                            block_q=self.block_q, block_k=self.block_k)
        o = o.transpose(0, 2, 1, 3).reshape(B, S, D).astype(x.dtype)
        return o @ self.Wo + self.bo


def _reference(module, x):
    """Pure-JAX f32 reference for sanity checks."""
    B, S, D = x.shape
    H, dh = module.heads, module.head_dim
    q = (x @ module.Wq + module.bq).reshape(B, S, H, dh).transpose(0, 2, 1, 3)
    k = (x @ module.Wk + module.bk).reshape(B, S, H, dh).transpose(0, 2, 1, 3)
    v = (x @ module.Wv + module.bv).reshape(B, S, H, dh).transpose(0, 2, 1, 3)
    s = jnp.einsum("bhqd,bhkd->bhqk", q, k) * module.scale
    if module.causal:
        idx = jnp.arange(S)
        s = jnp.where(idx[None, None, :, None] >= idx[None, None, None, :], s, -1e30)
    p = jax.nn.softmax(s, axis=-1)
    o = jnp.einsum("bhqk,bhkd->bhqd", p, v).transpose(0, 2, 1, 3).reshape(B, S, D)
    return o @ module.Wo + module.bo


if __name__ == "__main__":
    key = jax.random.PRNGKey(0)
    k_param, k_x, k_x2 = jax.random.split(key, 3)

    B, dim, heads = 2, 32, 8

    # 1) bf16 fast path, non-causal.  Small blocks force multiple Q/KV tiles so
    #    the online-softmax accumulation path is exercised at this toy size.
    S = 16
    x = jax.random.normal(k_x, (B, S, dim), dtype=jnp.float32)
    mod = StandardAttentionPallas(dim, heads=heads, causal=False, key=k_param,
                                  block_q=8, block_k=8)
    out = jax.block_until_ready(mod(x))
    ref = _reference(mod, x)
    assert out.shape == (B, S, dim)
    assert jnp.allclose(out, ref, atol=5e-3, rtol=5e-2), float(jnp.max(jnp.abs(out - ref)))

    # 2) bf16 fast path, causal: KV-tile skipping + clamped K/V index map.
    mod_c = StandardAttentionPallas(dim, heads=heads, causal=True, key=k_param,
                                    block_q=8, block_k=8)
    out_c = jax.block_until_ready(mod_c(x))
    ref_c = _reference(mod_c, x)
    assert jnp.allclose(out_c, ref_c, atol=5e-3, rtol=5e-2), float(jnp.max(jnp.abs(out_c - ref_c)))

    # 3/4) f32 path at a sequence length that does NOT divide the block size
    #      (exercises the cdiv grid + KV edge masking), tight tolerance.
    S2 = 12
    x2 = jax.random.normal(k_x2, (B, S2, dim), dtype=jnp.float32)
    for causal in (False, True):
        mod32 = StandardAttentionPallas(dim, heads=heads, causal=causal, key=k_param,
                                        block_q=8, block_k=8,
                                        compute_dtype=jnp.float32)
        o32 = jax.block_until_ready(mod32(x2))
        r32 = _reference(mod32, x2)
        assert jnp.allclose(o32, r32, atol=1e-4, rtol=1e-4), float(jnp.max(jnp.abs(o32 - r32)))

    print("KERNEL_OK")
</pallas_src>

<mosaic_0001>
module attributes {stable_mosaic.version = 11 : i64} {
  func.func @_flash_attention_kernel(%arg0: i32, %arg1: i32, %arg2: i32, %arg3: i32, %arg4: memref<1x1x8x4xbf16, #tpu.memory_space<vmem>>, %arg5: memref<1x1x8x4xbf16, #tpu.memory_space<vmem>>, %arg6: memref<1x1x8x4xbf16, #tpu.memory_space<vmem>>, %arg7: memref<1x1x8x4xbf16, #tpu.memory_space<vmem>>, %arg8: memref<8x128xf32, #tpu.memory_space<vmem>>, %arg9: memref<8x128xf32, #tpu.memory_space<vmem>>, %arg10: memref<8x4xf32, #tpu.memory_space<vmem>>) attributes {dimension_semantics = [#tpu.dimension_semantics<parallel>, #tpu.dimension_semantics<parallel>, #tpu.dimension_semantics<parallel>, #tpu.dimension_semantics<arbitrary>], iteration_bounds = array<i64: 2, 8, 2, 2>, scalar_prefetch = 0 : i64, scratch_operands = 3 : i64, tpu.core_type = #tpu.core_type<tc>, window_params = [{transform_indices = @transform_0, window_bounds = array<i64: 1, 1, 8, 4>}, {transform_indices = @transform_1, window_bounds = array<i64: 1, 1, 8, 4>}, {transform_indices = @transform_2, window_bounds = array<i64: 1, 1, 8, 4>}, {transform_indices = @transform_3, window_bounds = array<i64: 1, 1, 8, 4>}]} {
    %c0_i32 = arith.constant 0 : i32
    %0 = arith.cmpi eq, %arg3, %c0_i32 : i32
    %1 = arith.extui %0 : i1 to i32
    %c0_i32_0 = arith.constant 0 : i32
    %2 = arith.cmpi ne, %1, %c0_i32_0 : i32
    scf.if %2 {
      %cst_28 = arith.constant 0xFF800000 : f32
      %40 = vector.broadcast %cst_28 : f32 to vector<8x128xf32>
      %c0_29 = arith.constant 0 : index
      %c0_30 = arith.constant 0 : index
      %41 = vector.load %arg8[%c0_29, %c0_30] : memref<8x128xf32, #tpu.memory_space<vmem>>, vector<8x128xf32>
      tpu.vector_store %arg8[%c0_29, %c0_30], %40 {strides = array<i32>} : memref<8x128xf32, #tpu.memory_space<vmem>>, vector<8x128xf32>,
      %cst_31 = arith.constant 0.000000e+00 : f32
      %42 = vector.broadcast %cst_31 : f32 to vector<8x128xf32>
      %c0_32 = arith.constant 0 : index
      %c0_33 = arith.constant 0 : index
      %43 = vector.load %arg9[%c0_32, %c0_33] : memref<8x128xf32, #tpu.memory_space<vmem>>, vector<8x128xf32>
      tpu.vector_store %arg9[%c0_32, %c0_33], %42 {strides = array<i32>} : memref<8x128xf32, #tpu.memory_space<vmem>>, vector<8x128xf32>,
      %cst_34 = arith.constant 0.000000e+00 : f32
      %44 = vector.broadcast %cst_34 : f32 to vector<8x4xf32>
      %c0_35 = arith.constant 0 : index
      %c0_36 = arith.constant 0 : index
      %45 = vector.load %arg10[%c0_35, %c0_36] : memref<8x4xf32, #tpu.memory_space<vmem>>, vector<8x4xf32>
      tpu.vector_store %arg10[%c0_35, %c0_36], %44 {strides = array<i32>} : memref<8x4xf32, #tpu.memory_space<vmem>>, vector<8x4xf32>,
    } else {
    }
    %c0 = arith.constant 0 : index
    %c0_1 = arith.constant 0 : index
    %c0_2 = arith.constant 0 : index
    %c0_3 = arith.constant 0 : index
    %3 = vector.load %arg4[%c0, %c0_1, %c0_2, %c0_3] : memref<1x1x8x4xbf16, #tpu.memory_space<vmem>>, vector<1x1x8x4xbf16>
    %4 = vector.shape_cast %3 : vector<1x1x8x4xbf16> to vector<8x4xbf16>
    %c0_4 = arith.constant 0 : index
    %c0_5 = arith.constant 0 : index
    %c0_6 = arith.constant 0 : index
    %c0_7 = arith.constant 0 : index
    %5 = vector.load %arg5[%c0_4, %c0_5, %c0_6, %c0_7] : memref<1x1x8x4xbf16, #tpu.memory_space<vmem>>, vector<1x1x8x4xbf16>
    %6 = vector.shape_cast %5 : vector<1x1x8x4xbf16> to vector<8x4xbf16>
    %c0_8 = arith.constant 0 : index
    %c0_9 = arith.constant 0 : index
    %c0_10 = arith.constant 0 : index
    %c0_11 = arith.constant 0 : index
    %7 = vector.load %arg6[%c0_8, %c0_9, %c0_10, %c0_11] : memref<1x1x8x4xbf16, #tpu.memory_space<vmem>>, vector<1x1x8x4xbf16>
    %8 = vector.shape_cast %7 : vector<1x1x8x4xbf16> to vector<8x4xbf16>
    %cst = arith.constant dense<0.000000e+00> : vector<8x8xf32>
    %9 = tpu.matmul %4, %6, %cst {dimension_numbers = #tpu.dot_dimension_numbers<[1], [1], [0], [0], [0, 0, 1, 0], [], []>} : vector<8x4xbf16>, vector<8x4xbf16>, vector<8x8xf32> -> vector<8x8xf32>
    %c0_12 = arith.constant 0 : index
    %c0_13 = arith.constant 0 : index
    %10 = vector.load %arg8[%c0_12, %c0_13] : memref<8x128xf32, #tpu.memory_space<vmem>>, vector<8x1xf32>
    %c0_14 = arith.constant 0 : index
    %c0_15 = arith.constant 0 : index
    %11 = vector.load %arg9[%c0_14, %c0_15] : memref<8x128xf32, #tpu.memory_space<vmem>>, vector<8x1xf32>
    %cst_16 = arith.constant dense<0xFF800000> : vector<8xf32>
    %12 = vector.multi_reduction <maximumf>, %9, %cst_16 [1] : vector<8x8xf32> to vector<8xf32>
    %13 = vector.shape_cast %12 : vector<8xf32> to vector<8x1xf32>
    %14 = arith.maximumf %10, %13 : vector<8x1xf32>
    %15 = arith.subf %10, %14 : vector<8x1xf32>
    %16 = math.exp %15 : vector<8x1xf32>
    %17 = vector.broadcast %14 : vector<8x1xf32> to vector<8x8xf32>
    %18 = arith.subf %9, %17 : vector<8x8xf32>
    %19 = math.exp %18 : vector<8x8xf32>
    %20 = arith.mulf %16, %11 : vector<8x1xf32>
    %cst_17 = arith.constant dense<0.000000e+00> : vector<8xf32>
    %21 = vector.multi_reduction <add>, %19, %cst_17 [1] : vector<8x8xf32> to vector<8xf32>
    %22 = vector.shape_cast %21 : vector<8xf32> to vector<8x1xf32>
    %23 = arith.addf %20, %22 : vector<8x1xf32>
    %c0_18 = arith.constant 0 : index
    %c0_19 = arith.constant 0 : index
    %24 = vector.load %arg10[%c0_18, %c0_19] : memref<8x4xf32, #tpu.memory_space<vmem>>, vector<8x4xf32>
    %25 = vector.broadcast %16 : vector<8x1xf32> to vector<8x4xf32>
    %26 = arith.mulf %25, %24 : vector<8x4xf32>
    %27 = arith.truncf %19 : vector<8x8xf32> to vector<8x8xbf16>
    %cst_20 = arith.constant dense<0.000000e+00> : vector<8x4xf32>
    %28 = tpu.matmul %27, %8, %cst_20 {dimension_numbers = #tpu.dot_dimension_numbers<[1], [0], [0], [1], [0, 0, 1, 1], [], []>} : vector<8x8xbf16>, vector<8x4xbf16>, vector<8x4xf32> -> vector<8x4xf32>
    %29 = arith.addf %26, %28 : vector<8x4xf32>
    %c0_21 = arith.constant 0 : index
    %c0_22 = arith.constant 0 : index
    %30 = vector.load %arg10[%c0_21, %c0_22] : memref<8x4xf32, #tpu.memory_space<vmem>>, vector<8x4xf32>
    tpu.vector_store %arg10[%c0_21, %c0_22], %29 {strides = array<i32>} : memref<8x4xf32, #tpu.memory_space<vmem>>, vector<8x4xf32>,
    %31 = vector.shape_cast %14 : vector<8x1xf32> to vector<8x1xf32>
    %32 = vector.broadcast %31 : vector<8x1xf32> to vector<8x128xf32>
    %c0_23 = arith.constant 0 : index
    %c0_24 = arith.constant 0 : index
    %33 = vector.load %arg8[%c0_23, %c0_24] : memref<8x128xf32, #tpu.memory_space<vmem>>, vector<8x128xf32>
    tpu.vector_store %arg8[%c0_23, %c0_24], %32 {strides = array<i32>} : memref<8x128xf32, #tpu.memory_space<vmem>>, vector<8x128xf32>,
    %34 = vector.shape_cast %23 : vector<8x1xf32> to vector<8x1xf32>
    %35 = vector.broadcast %34 : vector<8x1xf32> to vector<8x128xf32>
    %c0_25 = arith.constant 0 : index
    %c0_26 = arith.constant 0 : index
    %36 = vector.load %arg9[%c0_25, %c0_26] : memref<8x128xf32, #tpu.memory_space<vmem>>, vector<8x128xf32>
    tpu.vector_store %arg9[%c0_25, %c0_26], %35 {strides = array<i32>} : memref<8x128xf32, #tpu.memory_space<vmem>>, vector<8x128xf32>,
    %c1_i32 = arith.constant 1 : i32
    %37 = arith.cmpi eq, %arg3, %c1_i32 : i32
    %38 = arith.extui %37 : i1 to i32
    %c0_i32_27 = arith.constant 0 : i32
    %39 = arith.cmpi ne, %38, %c0_i32_27 : i32
    scf.if %39 {
      %c0_28 = arith.constant 0 : index
      %c0_29 = arith.constant 0 : index
      %40 = vector.load %arg9[%c0_28, %c0_29] : memref<8x128xf32, #tpu.memory_space<vmem>>, vector<8x1xf32>
      %41 = tpu.reciprocal %40 {approx = true} : vector<8x1xf32> -> vector<8x1xf32>
      %42 = arith.mulf %40, %41 : vector<8x1xf32>
      %cst_30 = arith.constant 2.000000e+00 : f32
      %43 = vector.broadcast %cst_30 : f32 to vector<8x1xf32>
      %44 = arith.subf %43, %42 : vector<8x1xf32>
      %45 = arith.mulf %41, %44 : vector<8x1xf32>
      %c0_31 = arith.constant 0 : index
      %c0_32 = arith.constant 0 : index
      %46 = vector.load %arg10[%c0_31, %c0_32] : memref<8x4xf32, #tpu.memory_space<vmem>>, vector<8x4xf32>
      %47 = vector.broadcast %45 : vector<8x1xf32> to vector<8x4xf32>
      %48 = arith.mulf %46, %47 : vector<8x4xf32>
      %49 = arith.truncf %48 : vector<8x4xf32> to vector<8x4xbf16>
      %c0_33 = arith.constant 0 : index
      %c0_34 = arith.constant 0 : index
      %c0_35 = arith.constant 0 : index
      %c0_36 = arith.constant 0 : index
      %50 = vector.load %arg7[%c0_33, %c0_34, %c0_35, %c0_36] : memref<1x1x8x4xbf16, #tpu.memory_space<vmem>>, vector<1x1x8x4xbf16>
      %51 = vector.shape_cast %50 : vector<1x1x8x4xbf16> to vector<8x4xbf16>
      %52 = vector.shape_cast %49 : vector<8x4xbf16> to vector<1x1x8x4xbf16>
      tpu.vector_store %arg7[%c0_33, %c0_34, %c0_35, %c0_36], %52 {strides = array<i32>} : memref<1x1x8x4xbf16, #tpu.memory_space<vmem>>, vector<1x1x8x4xbf16>,
    } else {
    }
    return
  }
  func.func @transform_0(%arg0: i32, %arg1: i32, %arg2: i32, %arg3: i32) -> (i32, i32, i32, i32) {
    %c0_i32 = arith.constant 0 : i32
    %c0_i32_0 = arith.constant 0 : i32
    return %arg0, %arg1, %arg2, %c0_i32 : i32, i32, i32, i32
  }
  func.func @transform_1(%arg0: i32, %arg1: i32, %arg2: i32, %arg3: i32) -> (i32, i32, i32, i32) {
    %c0_i32 = arith.constant 0 : i32
    %c0_i32_0 = arith.constant 0 : i32
    return %arg0, %arg1, %arg3, %c0_i32 : i32, i32, i32, i32
  }
  func.func @transform_2(%arg0: i32, %arg1: i32, %arg2: i32, %arg3: i32) -> (i32, i32, i32, i32) {
    %c0_i32 = arith.constant 0 : i32
    %c0_i32_0 = arith.constant 0 : i32
    return %arg0, %arg1, %arg3, %c0_i32 : i32, i32, i32, i32
  }
  func.func @transform_3(%arg0: i32, %arg1: i32, %arg2: i32, %arg3: i32) -> (i32, i32, i32, i32) {
    %c0_i32 = arith.constant 0 : i32
    %c0_i32_0 = arith.constant 0 : i32
    return %arg0, %arg1, %arg2, %c0_i32 : i32, i32, i32, i32
  }
}

</mosaic_0001>

<bundles_post_ra>
// kernel: tpu_custom_call.1
= control target key start
LH: loop header
LB: loop body
LE: loop exit
PB: predicated region body
PF: predicated region fallthrough
CT: control target
= control target key end

     0   :  { %s887_s12 = smov 0   ;;  %s889_s13 = smov 0   ;;  %s1006_s0 = inlined_call_operand.vmem [shape: bf16[2,8,16,4], index: 0, kind: input, shape index: {}]   ;;  %s1007_s1 = inlined_call_operand.vmem [shape: bf16[2,8,16,4], index: 1, kind: input, shape index: {}]   ;;  %s1008_s2 = inlined_call_operand.vmem [shape: bf16[2,8,16,4], index: 2, kind: input, shape index: {}]   ;;  %s1009_s3 = inlined_call_operand.vmem [shape: bf16[2,8,16,4], index: 3, kind: output, shape index: {}]  }
   0x1   :  { %s891_s14 = smov 0   ;;  %s893_s15 = smov 0  }
   0x2   :  { %s895_s16 = smov 0   ;;  %s897_s17 = smov 0  }
   0x3   :  { %s899_s18 = smov 0   ;;  %s901_s19 = smov 0  }
   0x4   :  { %s903_s20 = smov 0  }
   0x5 LB: > { %s28_s21 = sadd.s32 1, %s843_s16  ;;  %s31_s22 = sadd.s32 1, %s847_s17  ;;  %s859_s20 = sphi %s903_s20, %s13_s20   ;;  %s855_s19 = sphi %s901_s19, %s1021_s19   ;;  %s851_s18 = sphi %s899_s18, %s1020_s18   ;;  %s847_s17 = sphi %s897_s17, %s1019_s17   ;;  %s843_s16 = sphi %s895_s16, %s1018_s16   ;;  %s839_s15 = sphi %s893_s15, %s1017_s15   ;;  %s835_s14 = sphi %s891_s14, %s1016_s14   ;;  %s831_s13 = sphi %s889_s13, %s1015_s13   ;;  %s827_s12 = sphi %s887_s12, %s1014_s12  }
   0x6   : > { %p29_p0 = scmp.ge.s32.totalorder %s28_s21, 2  ;;  %p667_p1 = scmp.ge.s32.totalorder %s859_s20, 1 }
   0x7   : > { %p220_p2 = scmp.lt.s32.totalorder %s859_s20, 65  ;;  %s35_s23 = sadd.s32 1, %s851_s18 }
   0x8   : > { %s1023_s21 = smov (%p29_p0, %s28_s21), 0  ;;  %s1025_s22 = smov (!%p29_p0, %s31_s22), %s847_s17 }
   0x9   : > { %p33_p3 = scmp.ge.s32.totalorder %s1025_s22, 2  ;;  %p221_p4 = pnand %p667_p1, %p220_p2 }
   0xa   : > { %s39_s24 = sadd.s32 1, %s855_s19  ;;  %p282_p7 = scmp.lt.s32.totalorder (!%p221_p4), %s839_s15, 1 }
   0xb   : > { %s1027_s22 = smov (%p33_p3, %s1025_s22), 0  ;;  %s1029_s23 = smov (!%p33_p3, %s35_s23), %s851_s18 }
   0xc   : > { %p37_p5 = scmp.ge.s32.totalorder %s1029_s23, 8  ;;  %224 = sbr.rel (%p221_p4) target bundleno = 973 (0x3cd), region = 32 }
   0xd   : > { %p284_p8 = scmp.lt.s32.totalorder (!%p221_p4), %s835_s14, 7  ;;  %p286_p9 = scmp.lt.s32.totalorder (!%p221_p4), %s831_s13, 1 }
   0xe   : > { %s1031_s23 = smov (%p37_p5, %s1029_s23), 0  ;;  %s1033_s24 = smov (!%p37_p5, %s39_s24), %s855_s19 }
   0xf   : > { %1010 = sst [smem:[#allocation5_spill]] %s1031_s23  ;;  %p41_p6 = scmp.ge.s32.totalorder %s1033_s24, 2 }
  0x10   : > { %p298_p10 = scmp.lt.s32.totalorder (!%p221_p4), %s827_s12, 1  ;;  %p680_p11 = scmp.ne.s32.totalorder (!%p221_p4), %s827_s12, 0 }
  0x11   : > { %s1035_s24 = smov (%p41_p6, %s1033_s24), 0 }
  0x12   : > { %1011 = sst [smem:[#allocation6_spill]] %s1035_s24 }
  0x13   : > { %s1037_s15 = smov (!%p282_p7, %s839_s15), 1  ;;  %s1039_s14 = smov (!%p284_p8, %s835_s14), 7 }
  0x14   : > { %s1041_s13 = smov (!%p286_p9, %s831_s13), 1  ;;  %s668_s25 = sshll.u32 %s1039_s14, 1  ;;  %vm337_vm0 = vcmask (!%p680_p11), 31744   ;;  %v861_v0 = vmov (!%p680_p11), -inf   ;;  %v862_v1 = vmov (!%p680_p11), 0.0  }
  0x15   : > { %s669_s26 = sshll.u32 %s1037_s15, 4  ;;  %s289_s27 = sadd.s32 %s668_s25, %s1041_s13  ;;  %335 = vst [vmem:[#allocation2] sm:$0xff] (!%p680_p11), %v861_v0  ;;  %336 = vst [vmem:[#allocation3] sm:$0xff] (!%p680_p11), %v862_v1 }
  0x16   : > { %s291_s28 = sadd.s32 %s669_s26, %s289_s27  ;;  %338 = vst.msk [vmem:[#allocation4] sm:$0xff] (!%p680_p11), %vm337_vm0, %v862_v1 }
  0x17   : > { %s670_s29 = sshll.u32 %s291_s28, 2 }
  0x18   : > { %s293_s5 = scalar_lea.vmem %s1006_s0, %s670_s29  ;;  %s958_s8 = scalar_lea.vmem %s1009_s3, %s670_s29 }
  0x19   : > { %s299_s9 = scalar_select %p298_p10, %s827_s12, 1 }
  0x1a   : > { %334 = sbr.rel (%p680_p11) target bundleno = 33 (0x21), region = 36 }
  0x1b   : > { %s301_s10 = sadd.s32 %s668_s25, %s299_s9 }
  0x1c   : > { %s303_s11 = sadd.s32 %s669_s26, %s301_s10 }
  0x1d   : > { %s673_s24 = sshll.u32 %s303_s11, 2 }
  0x1e   : > { %s305_s13 = scalar_lea.vmem %s1007_s1, %s673_s24  ;;  %s967_s28 = scalar_lea.vmem %s1008_s2, %s673_s24 }
  0x21 PF: > { %v340_v2 = vld [vmem:[%s305_s13] sm:$0xf]  ;;  %vm342_vm1 = vcmask 31744   ;;  %v863_v3 = vmov 0.0   ;;  %vm864_vm2 = vmmov 0   ;;  %vm391_vm3 = vcmask 64512  }
  0x22   : > { %690 = vmatprep.subr.bf16.mxu0 %v863_v3  ;;  %v347_v4 = vsel %vm342_vm1, %v340_v2, 0  ;;  %692 = vmatprep.mubr.msk.bf16.mxu0 %vm864_vm2, %v863_v3  ;;  %v339_v5 = vld [vmem:[%s293_s5] sm:$0xf]  ;;  %v865_v11 = vmov 0   ;;  %vm423_vm4 = vcmask 1043456   ;;  %v390_v26 = vld [vmem:[#allocation3] sm:$0xff] }
  0x23   : > { %691 = vmatpush3.bf16.xpose.msra.mxu0 %v347_v4  ;;  %696 = vmatprep.subr.bf16.mxu1 %v863_v3  ;;  %v389_v12 = vld [vmem:[#allocation2] sm:$0xff]  ;;  %v412_v30 = vld [vmem:[#allocation4] sm:$0xff]  ;;  %p683_p12 = scmp.ne.s32.totalorder %s827_s12, 1 }
  0x24   : > { %698 = vmatprep.mubr.msk.bf16.mxu1 %vm864_vm2, %v863_v3  ;;  %780 = vset.pattern.permute.xlu0 %v865_v11  ;;  %v341_v15 = vld [vmem:[%s967_s28] sm:$0xf]  ;;  %v866_v40 = vmov (!%p683_p12), 0   ;;  %vm493_vm5 = vcmask (!%p683_p12), 27648  }
  0x25   : > { %781 = vset.pattern.permute.xlu1 %v865_v11  ;;  %v425_v16 = vsel %vm423_vm4, %v341_v15, 0 }
  0x26   : > { %697 = vmatpush3.bf16.msra.mxu1 %v425_v16 }
  0x2a   : > { %693 = vmatmul.mubr.msk.bf16.vlgmr.msra.gmra.mrb[0].mxu0 %vm342_vm1, %v339_v5 }
  0xfd   : > { %v383_v6 = vpop.f32.mrb[0].mxu0 }
  0xfe   : > { %v694_v7 = vpop.f32.mrb[1].mxu0  ;;  %v392_v8 = vsel %vm391_vm3, %v383_v6, -inf }
  0xff   : > { %393 = vmax.xlane.f32.xlu0 %v392_v8  ;;  %v386_v9 = vpop.f32.mrb[2].mxu0 }
 0x100   : > { %v695_v10 = vpop.f32.mrb[3].mxu0 }
 0x18c   : > { %v394_v13 = vpop.xlane.xlu0 %393 }
 0x18d   : > { %v395_v14 = vmax.f32 %v389_v12, %v394_v13 }
 0x18f   : > { %401 = vperm.xlu0 %780, %v395_v14   ;;  %v396_v21 = vsub.f32 %v389_v12, %v395_v14 }
 0x191   : > { %v397_v24 = vmul.f32 1.442695, %v396_v21 }
 0x193   : > { %786 = vset.pattern.permute.xlu0 (!%p683_p12), %v866_v40 }
 0x20e   : > { %v402_v17 = vpop.permute.xlu0 %401 }
 0x20f   : > { %v404_v18 = vsub.f32 %v383_v6, %v402_v17  ;;  %469 = vst [vmem:[#allocation2] sm:$0xff] %v402_v17 }
 0x211   : > { %v405_v19 = vmul.f32 1.442695, %v404_v18 }
 0x213   : > { %782 = vpow2.f32 %v405_v19 }
 0x214   : > { %784 = vpow2.f32 %v397_v24 }
 0x21d   : > { %v783_v20 = vpop.eup %782 }
 0x21e   : > { %v408_v22 = vsel %vm391_vm3, %v783_v20, 0.0  ;;  %v419_v23 = vpack.c.bf16 %v783_v20, %v783_v20  ;;  %v785_v25 = vpop.eup %784 }
 0x21f   : > { %409 = vadd.xlane.f32.xlu1 %v408_v22  ;;  %v407_v27 = vmul.f32 %v785_v25, %v390_v26 }
 0x220   : > { %699 = vmatmul.mubr.msk.bf16.vlgmr.msra.gmra.mrb[0].mxu1 %vm391_vm3, %v419_v23 }
 0x230   : > { %415 = vperm.xlu1 %781, %v785_v25  }
 0x2ac   : > { %v410_v28 = vpop.xlane.xlu1 %409 }
 0x2ad   : > { %v411_v29 = vadd.f32 %v410_v28, %v407_v27 }
 0x2af   : > { %472 = vperm.xlu1 %781, %v411_v29  }
 0x2b0   : > { %v416_v31 = vpop.permute.xlu1 %415 }
 0x2b1   : > { %v418_v32 = vmul.f32 %v416_v31, %v412_v30 }
 0x2f3   : > { %v461_v33 = vpop.f32.mrb[0].mxu1 }
 0x2f4   : > { %v467_v34 = vadd.f32 %v461_v33, %v418_v32  ;;  %v700_v35 = vpop.f32.mrb[1].mxu1 }
 0x2f5   : > { %v464_v36 = vpop.f32.mrb[2].mxu1 }
 0x2f6   : > { %468 = vst.msk [vmem:[#allocation4] sm:$0xff] %vm342_vm1, %v467_v34  ;;  %v701_v37 = vpop.f32.mrb[3].mxu1 }
 0x2fd   : > { %v485_v45 = vld [vmem:[#allocation4] sm:$0xff] (!%p683_p12) }
 0x329   : > { %479 = sbr.rel (%p683_p12) target bundleno = 973 (0x3cd), region = 40 }
 0x32e   : > { %v473_v38 = vpop.permute.xlu1 %472 }
 0x32f   : > { %475 = vst [vmem:[#allocation3] sm:$0xff] %v473_v38 }
 0x336   : > { %v480_v39 = vld [vmem:[#allocation3] sm:$0xff] }
 0x337   : > { %787 = vrcp.f32 %v480_v39 }
 0x341   : > { %v788_v41 = vpop.eup %787 }
 0x342   : > { %v482_v42 = vmul.f32 %v788_v41, %v480_v39 }
 0x344   : > { %v483_v43 = vsub.f32 2.0, %v482_v42 }
 0x346   : > { %v484_v44 = vmul.f32 %v788_v41, %v483_v43 }
 0x348   : > { %488 = vperm.xlu0 %786, %v484_v44  }
 0x3c7   : > { %v489_v46 = vpop.permute.xlu0 %488 }
 0x3c8   : > { %v491_v47 = vmul.f32 %v489_v46, %v485_v45 }
 0x3ca   : > { %v492_v48 = vpack.c.bf16 %v491_v47, %v491_v47 }
 0x3cc   : > { %494 = vst.msk [vmem:[%s958_s8] sm:$0xf] %vm493_vm5, %v492_v48 }
 0x3cd PF: > { %s13_s20 = sadd.s32 1, %s859_s20   ;;  %s1012_s23 = sld [smem:[#allocation5_spill]] }
 0x3ce   : > { %p10_p13 = scmp.ge.s32.totalorder %s13_s20, 66   ;;  %s1013_s24 = sld [smem:[#allocation6_spill]] }
 0x3cf   : > { %s1014_s12 = smov %s843_s16  ;;  %s1015_s13 = smov %s847_s17 }
 0x3d0   : > { %s1016_s14 = smov %s851_s18  ;;  %s1017_s15 = smov %s855_s19 }
 0x3d1   : > { %s1018_s16 = smov %s1023_s21  ;;  %s1019_s17 = smov %s1027_s22 }
 0x3d2   :  { %12 = sbr.rel (!%p10_p13) target bundleno = 5 (0x5), region = 76 }
 0x3d3   : > { %s1020_s18 = smov %s1012_s23 }
 0x3d4   : > { %s1021_s19 = smov %s1013_s24 }

</bundles_post_ra>
